<compile_context>
chip_gen: v7x
topology: tpu7x:2x2x1
jax: 0.10.0
libtpu: 0.0.40
codegen_flags: <defaults>
</compile_context>

<pallas_src>
import functools

import jax
import jax.numpy as jnp
from jax import lax
from jax.experimental import pallas as pl
from jax.experimental.pallas import tpu as pltpu

_HIDDEN = 50      # nn.Linear(in_features=D, out_features=50)
_LANE = 128
_SUBLANE = 8

_HAS_BUFFERED = hasattr(pl, "Buffered")


def _round_up(x, m):
    return ((x + m - 1) // m) * m


def _vmem_capacity_bytes():
    try:
        cap = int(getattr(pltpu.get_tpu_info(), "vmem_capacity_bytes"))
        if cap > 0:
            return cap
    except Exception:
        pass
    return 64 * 1024 * 1024       # v7x per-TC floor; conservative for v5e/v6e (128 MiB)


def _plan(n, d, hid_pad, x_itemsize, out_itemsize, w_itemsize):
    """Pick batch tile and scoped-VMEM limit (generation- and dtype-aware)."""
    vmem_cap = _vmem_capacity_bytes()
    vmem_limit = int(min((vmem_cap * 3) // 4, 112 * 1024 * 1024))   # ~48 MiB v7x, ~96 MiB v5e/v6e
    w_bufs = 1 if _HAS_BUFFERED else 2
    resident = w_bufs * (2 * d * hid_pad * w_itemsize + (hid_pad + d) * 4)
    act_budget = vmem_limit - resident - (4 << 20)      # headroom for h + compiler scratch
    per_row = 2 * d * (x_itemsize + out_itemsize) + hid_pad * 4     # dbl-buffered x/out + f32 hidden
    max_rows = act_budget // per_row if act_budget > per_row else _SUBLANE
    cap = int(min(4096, max(_SUBLANE, max_rows)))
    if cap >= n:
        tile_n = n                                      # one block; full-dim block is always legal
    else:
        tile_n = max(_SUBLANE, (cap // _SUBLANE) * _SUBLANE)
    return tile_n, vmem_limit


def _keep_mask_half(shape, seed_i32, tile_i32):
    """Deterministic Bernoulli(0.5) keep-mask from a counter-based hash (no HW PRNG needed)."""
    rows = lax.broadcasted_iota(jnp.int32, shape, 0)
    cols = lax.broadcasted_iota(jnp.int32, shape, 1)
    x = lax.convert_element_type(rows * shape[1] + cols, jnp.uint32)
    seed_u = lax.convert_element_type(seed_i32, jnp.uint32)
    tile_u = lax.convert_element_type(tile_i32, jnp.uint32)
    salt = seed_u * jnp.uint32(0x9E3779B1) + tile_u * jnp.uint32(0x85EBCA77) + jnp.uint32(1)
    x = x ^ salt
    # murmur3 fmix32 finalizer
    x = x ^ (x >> 16)
    x = x * jnp.uint32(0x7FEB352D)
    x = x ^ (x >> 15)
    x = x * jnp.uint32(0x846CA68B)
    x = x ^ (x >> 16)
    return x < jnp.uint32(0x80000000)                   # P(keep) = 0.5


def _ae_kernel(seed_ref, x_ref, w1_ref, b1_ref, w2_ref, b2_ref, o_ref, *, train):
    # seed_ref: (1,) i32 in SMEM (scalar prefetch)
    # x_ref : (TILE_N, D) compute dtype     w1_ref: (D, H_pad) compute dtype
    # b1_ref: (1, H_pad) f32                w2_ref: (H_pad, D) compute dtype
    # b2_ref: (1, D) f32                    o_ref : (TILE_N, D) out dtype
    x = x_ref[...]
    h = jnp.dot(x, w1_ref[...], preferred_element_type=jnp.float32) + b1_ref[...]
    h = jnp.tanh(h)
    if train:
        # nn.Dropout(p=0.5): zero half, scale survivors by 2 (folded into h + h).
        # TODO(synk): mask stream differs from torch's RNG; semantics (zero half, 2x) match.
        keep = _keep_mask_half(h.shape, seed_ref[0], pl.program_id(0))
        h = jnp.where(keep, h + h, jnp.zeros_like(h))
    out = jnp.dot(h.astype(w2_ref.dtype), w2_ref[...],
                  preferred_element_type=jnp.float32) + b2_ref[...]
    o_ref[...] = out.astype(o_ref.dtype)


def simple_ae_v2(x_nhwc, params, *, train=False, seed=0, out_dtype=None):
    """Forward pass of SimpleAEv2.  x_nhwc: (N, H, W, C); compute dtype follows x."""
    n, hh, ww, cc = x_nhwc.shape
    d = hh * ww * cc
    w1, b1, w2, b2 = params               # (D,50), (1,50), (50,D), (1,D) -- already (in, out)
    hidden = w1.shape[1]
    hid_pad = _round_up(hidden, _LANE)

    cdt = x_nhwc.dtype                                        # matmul-input dtype (no x cast pass)
    odt = jnp.dtype(out_dtype) if out_dtype is not None else x_nhwc.dtype

    # Pad only the tiny, resident weights on the hidden axis (exact zeros keep the math
    # identical: padded hidden columns give tanh(0)=0 and hit zero rows of w2).  D is never padded.
    w1p = jnp.zeros((d, hid_pad), cdt).at[:, :hidden].set(w1.astype(cdt))
    b1p = jnp.zeros((1, hid_pad), jnp.float32).at[:, :hidden].set(b1.astype(jnp.float32))
    w2p = jnp.zeros((hid_pad, d), cdt).at[:hidden, :].set(w2.astype(cdt))
    b2p = b2.astype(jnp.float32).reshape(1, d)

    x2d = x_nhwc.reshape(n, d)            # metadata-only reshape (matches torch's X.view)

    tile_n, vmem_limit = _plan(n, d, hid_pad,
                               jnp.dtype(cdt).itemsize, jnp.dtype(odt).itemsize,
                               jnp.dtype(cdt).itemsize)
    grid = (pl.cdiv(n, tile_n),)

    resident_kw = {"pipeline_mode": pl.Buffered(buffer_count=1)} if _HAS_BUFFERED else {}

    def _resident(shape):
        return pl.BlockSpec(shape, lambda i, *_: (0,) * len(shape), **resident_kw)

    seed_arr = jnp.asarray([seed], dtype=jnp.int32)
    kernel = functools.partial(_ae_kernel, train=train)

    cost = pl.CostEstimate(
        flops=4 * n * d * hid_pad,                              # two matmuls
        transcendentals=n * hid_pad,                            # tanh
        bytes_accessed=(n * d * (jnp.dtype(cdt).itemsize + jnp.dtype(odt).itemsize)
                        + 2 * d * hid_pad * jnp.dtype(cdt).itemsize
                        + (hid_pad + d) * 4),
    )

    out2d = pl.pallas_call(
        kernel,
        out_shape=jax.ShapeDtypeStruct((n, d), odt),
        grid_spec=pltpu.PrefetchScalarGridSpec(
            num_scalar_prefetch=1,                              # seed -> SMEM
            grid=grid,
            in_specs=[
                pl.BlockSpec((tile_n, d), lambda i, *_: (i, 0)),   # x tile (streamed)
                _resident((d, hid_pad)),                           # w1 (resident)
                _resident((1, hid_pad)),                           # b1 (resident)
                _resident((hid_pad, d)),                           # w2 (resident)
                _resident((1, d)),                                 # b2 (resident)
            ],
            out_specs=pl.BlockSpec((tile_n, d), lambda i, *_: (i, 0)),
        ),
        compiler_params=pltpu.CompilerParams(
            dimension_semantics=("parallel",),                  # shard batch tiles across TCs
            vmem_limit_bytes=vmem_limit,
        ),
        cost_estimate=cost,
    )(seed_arr, x2d, w1p, b1p, w2p, b2p)

    return out2d.reshape(n, hh, ww, cc)


def init_params(key, grid_h, grid_w, chs):
    """Deterministic init matching the nn.Linear shapes (PyTorch-style uniform)."""
    d = grid_h * grid_w * chs
    hidden = _HIDDEN
    k1, k2, k3, k4 = jax.random.split(key, 4)
    bound1 = 1.0 / jnp.sqrt(d)
    bound2 = 1.0 / jnp.sqrt(hidden)
    # Stored already transposed for x @ W: (in, out).
    w1 = jax.random.uniform(k1, (d, hidden), jnp.float32, -bound1, bound1)
    b1 = jax.random.uniform(k2, (1, hidden), jnp.float32, -bound1, bound1)
    w2 = jax.random.uniform(k3, (hidden, d), jnp.float32, -bound2, bound2)
    b2 = jax.random.uniform(k4, (1, d), jnp.float32, -bound2, bound2)
    return w1, b1, w2, b2


if __name__ == "__main__":
    # Small shapes consistent with the module: grid_h=4, grid_w=4, chs=4 -> D=64, batch=2.
    grid_h, grid_w, chs = 4, 4, 4
    batch = 2

    key = jax.random.PRNGKey(0)
    k_x, k_p = jax.random.split(key)
    x = jax.random.normal(k_x, (batch, grid_h, grid_w, chs), dtype=jnp.float32)
    params = init_params(k_p, grid_h, grid_w, chs)
    w1, b1, w2, b2 = params

    # Eval-mode f32 forward (Dropout is identity) -- tight check vs pure-JAX reference.
    # (Force highest matmul precision for both kernel and reference so the comparison is
    #  robust on real TPUs whose default f32 matmul path truncates to bf16.)
    with jax.default_matmul_precision("highest"):
        out = simple_ae_v2(x, params, train=False)
        jax.block_until_ready(out)
        ref = (jnp.tanh(x.reshape(batch, -1) @ w1 + b1) @ w2 + b2).reshape(out.shape)
    assert out.shape == (batch, grid_h, grid_w, chs), out.shape
    assert out.dtype == jnp.float32, out.dtype
    assert jnp.allclose(out, ref, atol=1e-4, rtol=1e-4)

    # bf16 activation path: caller supplies bf16 x -> bf16 HBM traffic + bf16 output,
    # f32 accumulation stays inside the kernel.  Loose check vs the f32 reference.
    out_bf16 = simple_ae_v2(x.astype(jnp.bfloat16), params, train=False)
    jax.block_until_ready(out_bf16)
    assert out_bf16.dtype == jnp.bfloat16, out_bf16.dtype
    assert jnp.allclose(out_bf16.astype(jnp.float32), ref, atol=5e-2, rtol=5e-2)

    # Train-mode forward exercises the in-kernel hash-based dropout path.
    out_tr = simple_ae_v2(x, params, train=True, seed=1234)
    jax.block_until_ready(out_tr)
    assert out_tr.shape == (batch, grid_h, grid_w, chs)
    assert bool(jnp.all(jnp.isfinite(out_tr)))

    print("KERNEL_OK")
</pallas_src>

<mosaic_0001>
module attributes {stable_mosaic.version = 11 : i64} {
  func.func @_ae_kernel(%arg0: i32, %arg1: memref<1xi32, #tpu.memory_space<smem>>, %arg2: memref<2x64xf32, #tpu.memory_space<vmem>>, %arg3: memref<64x128xf32, #tpu.memory_space<vmem>>, %arg4: memref<1x128xf32, #tpu.memory_space<vmem>>, %arg5: memref<128x64xf32, #tpu.memory_space<vmem>>, %arg6: memref<1x64xf32, #tpu.memory_space<vmem>>, %arg7: memref<2x64xf32, #tpu.memory_space<vmem>>) attributes {dimension_semantics = [#tpu.dimension_semantics<parallel>], iteration_bounds = array<i64: 1>, scalar_prefetch = 1 : i64, scratch_operands = 0 : i64, tpu.core_type = #tpu.core_type<tc>, window_params = [{transform_indices = @transform_0, window_bounds = array<i64: 2, 64>}, {pipeline_mode = #tpu.pipeline_mode<synchronous>, transform_indices = @transform_1, window_bounds = array<i64: 64, 128>}, {pipeline_mode = #tpu.pipeline_mode<synchronous>, transform_indices = @transform_2, window_bounds = array<i64: 1, 128>}, {pipeline_mode = #tpu.pipeline_mode<synchronous>, transform_indices = @transform_3, window_bounds = array<i64: 128, 64>}, {pipeline_mode = #tpu.pipeline_mode<synchronous>, transform_indices = @transform_4, window_bounds = array<i64: 1, 64>}, {transform_indices = @transform_5, window_bounds = array<i64: 2, 64>}]} {
    %c0 = arith.constant 0 : index
    %c0_0 = arith.constant 0 : index
    %0 = vector.load %arg2[%c0, %c0_0] : memref<2x64xf32, #tpu.memory_space<vmem>>, vector<2x64xf32>
    %c0_1 = arith.constant 0 : index
    %c0_2 = arith.constant 0 : index
    %1 = vector.load %arg3[%c0_1, %c0_2] : memref<64x128xf32, #tpu.memory_space<vmem>>, vector<64x128xf32>
    %cst = arith.constant dense<0.000000e+00> : vector<2x128xf32>
    %2 = tpu.matmul %0, %1, %cst {dimension_numbers = #tpu.dot_dimension_numbers<[1], [0], [0], [1], [0, 0, 1, 1], [], []>, precision = #tpu.contract_precision<fp32>} : vector<2x64xf32>, vector<64x128xf32>, vector<2x128xf32> -> vector<2x128xf32>
    %c0_3 = arith.constant 0 : index
    %c0_4 = arith.constant 0 : index
    %3 = vector.load %arg4[%c0_3, %c0_4] : memref<1x128xf32, #tpu.memory_space<vmem>>, vector<1x128xf32>
    %4 = vector.broadcast %3 : vector<1x128xf32> to vector<2x128xf32>
    %5 = arith.addf %2, %4 : vector<2x128xf32>
    %6 = math.tanh %5 : vector<2x128xf32>
    %c0_5 = arith.constant 0 : index
    %c0_6 = arith.constant 0 : index
    %7 = vector.load %arg5[%c0_5, %c0_6] : memref<128x64xf32, #tpu.memory_space<vmem>>, vector<128x64xf32>
    %cst_7 = arith.constant dense<0.000000e+00> : vector<2x64xf32>
    %8 = tpu.matmul %6, %7, %cst_7 {dimension_numbers = #tpu.dot_dimension_numbers<[1], [0], [0], [1], [0, 0, 1, 1], [], []>, precision = #tpu.contract_precision<fp32>} : vector<2x128xf32>, vector<128x64xf32>, vector<2x64xf32> -> vector<2x64xf32>
    %c0_8 = arith.constant 0 : index
    %c0_9 = arith.constant 0 : index
    %9 = vector.load %arg6[%c0_8, %c0_9] : memref<1x64xf32, #tpu.memory_space<vmem>>, vector<1x64xf32>
    %10 = vector.broadcast %9 : vector<1x64xf32> to vector<2x64xf32>
    %11 = arith.addf %8, %10 : vector<2x64xf32>
    %c0_10 = arith.constant 0 : index
    %c0_11 = arith.constant 0 : index
    %12 = vector.load %arg7[%c0_10, %c0_11] : memref<2x64xf32, #tpu.memory_space<vmem>>, vector<2x64xf32>
    tpu.vector_store %arg7[%c0_10, %c0_11], %11 {strides = array<i32>} : memref<2x64xf32, #tpu.memory_space<vmem>>, vector<2x64xf32>,
    return
  }
  func.func @transform_0(%arg0: i32, %arg1: memref<1xi32, #tpu.memory_space<smem>>) -> (i32, i32) {
    %c0_i32 = arith.constant 0 : i32
    %c0_i32_0 = arith.constant 0 : i32
    return %arg0, %c0_i32 : i32, i32
  }
  func.func @transform_1(%arg0: i32, %arg1: memref<1xi32, #tpu.memory_space<smem>>) -> (i32, i32) {
    %c0_i32 = arith.constant 0 : i32
    %c0_i32_0 = arith.constant 0 : i32
    %c0_i32_1 = arith.constant 0 : i32
    return %c0_i32, %c0_i32_0 : i32, i32
  }
  func.func @transform_2(%arg0: i32, %arg1: memref<1xi32, #tpu.memory_space<smem>>) -> (i32, i32) {
    %c0_i32 = arith.constant 0 : i32
    %c0_i32_0 = arith.constant 0 : i32
    %c0_i32_1 = arith.constant 0 : i32
    return %c0_i32, %c0_i32_0 : i32, i32
  }
  func.func @transform_3(%arg0: i32, %arg1: memref<1xi32, #tpu.memory_space<smem>>) -> (i32, i32) {
    %c0_i32 = arith.constant 0 : i32
    %c0_i32_0 = arith.constant 0 : i32
    %c0_i32_1 = arith.constant 0 : i32
    return %c0_i32, %c0_i32_0 : i32, i32
  }
  func.func @transform_4(%arg0: i32, %arg1: memref<1xi32, #tpu.memory_space<smem>>) -> (i32, i32) {
    %c0_i32 = arith.constant 0 : i32
    %c0_i32_0 = arith.constant 0 : i32
    %c0_i32_1 = arith.constant 0 : i32
    return %c0_i32, %c0_i32_0 : i32, i32
  }
  func.func @transform_5(%arg0: i32, %arg1: memref<1xi32, #tpu.memory_space<smem>>) -> (i32, i32) {
    %c0_i32 = arith.constant 0 : i32
    %c0_i32_0 = arith.constant 0 : i32
    return %arg0, %c0_i32 : i32, i32
  }
}

</mosaic_0001>

<bundles_post_ra>
// kernel: tpu_custom_call.1
= control target key start
LH: loop header
LB: loop body
LE: loop exit
PB: predicated region body
PF: predicated region fallthrough
CT: control target
= control target key end

     0   :  { %v2010_v3 = vmov 0.0|0.0   ;;  %vm2011_vm0 = vmmov 0   ;;  %v2012_v10 = vmov 0.0   ;;  %vm39_vm1 = vcmask 523264   ;;  %s2567_s0 = inlined_call_operand.<no memory space> [shape: s32[1], index: 0, kind: input, shape index: {}]   ;;  %s2568_s1 = inlined_call_operand.vmem [shape: f32[2,64], index: 1, kind: input, shape index: {}]   ;;  %s2569_s2 = inlined_call_operand.vmem [shape: f32[64,128], index: 2, kind: input, shape index: {}]   ;;  %s2570_s3 = inlined_call_operand.vmem [shape: f32[1,128], index: 3, kind: input, shape index: {}]   ;;  %s2571_s4 = inlined_call_operand.vmem [shape: f32[128,64], index: 4, kind: input, shape index: {}]   ;;  %s2572_s5 = inlined_call_operand.vmem [shape: f32[1,64], index: 5, kind: input, shape index: {}]   ;;  %s2573_s6 = inlined_call_operand.hbm [shape: f32[2,64], index: 6, kind: output, shape index: {}]  }
   0x1   :  { %v24_v0 = vld [vmem:[%s2569_s2] sm:$0xff]  ;;  %v25_v1 = vld [vmem:[%s2569_s2 + $0x8] sm:$0xff]  ;;  %v26_v2 = vld [vmem:[%s2569_s2 + $0x10] sm:$0xff]  ;;  %1743 = vmatprep.subr.bf16.mxu0 %v2010_v3  ;;  %1435 = vmatprep.mubr.msk.f32.mxu0 %vm2011_vm0, %v2012_v10 }
   0x2   :  { %v44_v4 = vand.u32 4294901760, %v24_v0  ;;  %v47_v5 = vand.u32 4294901760, %v25_v1  ;;  %v27_v6 = vld [vmem:[%s2569_s2 + $0x18] sm:$0xff]  ;;  %v50_v7 = vand.u32 4294901760, %v26_v2  ;;  %v28_v8 = vld [vmem:[%s2569_s2 + $0x20] sm:$0xff]  ;;  %v29_v9 = vld [vmem:[%s2569_s2 + $0x28] sm:$0xff]  ;;  %1839 = vmatprep.subr.bf16.mxu1 %v2010_v3  ;;  %1600 = vmatprep.mubr.msk.f32.mxu1 %vm2011_vm0, %v2012_v10 }
   0x3   :  { %v53_v11 = vand.u32 4294901760, %v27_v6  ;;  %v56_v12 = vand.u32 4294901760, %v28_v8  ;;  %v59_v13 = vand.u32 4294901760, %v29_v9  ;;  %v30_v14 = vld [vmem:[%s2569_s2 + $0x30] sm:$0xff]  ;;  %v23_v19 = vld [vmem:[%s2568_s1] sm:$0x3] }
   0x4   :  { %v2076_v15 = vpack.c.bf16 %v47_v5, %v44_v4  ;;  %v2078_v16 = vsub.f32 %v24_v0, %v44_v4  ;;  %v2080_v17 = vsub.f32 %v25_v1, %v47_v5  ;;  %v2082_v18 = vsub.f32 %v26_v2, %v50_v7  ;;  %v31_v22 = vld [vmem:[%s2569_s2 + $0x38] sm:$0xff] }
   0x5   :  { %v2087_v20 = vpack.c.bf16 %v53_v11, %v50_v7  ;;  %v2089_v21 = vsub.f32 %v27_v6, %v53_v11  ;;  %v2095_v23 = vsub.f32 %v28_v8, %v56_v12  ;;  %v2097_v24 = vsub.f32 %v29_v9, %v59_v13 }
   0x6   :  { %1745 = vmatpush3.bf16.msra.mxu0 %v2076_v15  ;;  %v62_v25 = vand.u32 4294901760, %v30_v14  ;;  %v41_v26 = vsel %vm39_vm1, %v23_v19, 0  ;;  %v129_v28 = vand.u32 4294901760, %v2078_v16  ;;  %v136_v29 = vand.u32 4294901760, %v2080_v17 }
   0x7   :  { %1746 = vmatprep.subr.bf16.mxu0 %v2010_v3  ;;  %v2100_v27 = vand.u32 4294901760, %v41_v26  ;;  %v143_v30 = vand.u32 4294901760, %v2082_v18  ;;  %v65_v31 = vand.u32 4294901760, %v31_v22  ;;  %v150_v33 = vand.u32 4294901760, %v2089_v21 }
   0x8   :  { %v2105_v32 = vsub.f32 %v30_v14, %v62_v25 }
   0x9   :  { %12 = vsyncpa [#allocation5], 0  ;;  %v2109_v34 = vsub.f32 %v41_v26, %v2100_v27  ;;  %v130_v35 = vsub.f32 %v2078_v16, %v129_v28  ;;  %v137_v36 = vsub.f32 %v2080_v17, %v136_v29  ;;  %v144_v37 = vsub.f32 %v2082_v18, %v143_v30  ;;  %v581_v53 = vld [vmem:[%s2571_s4] sm:$0xff]  ;;  %v582_v54 = vld [vmem:[%s2571_s4 + $0x8] sm:$0xff]  ;;  %s2013_s19 = smov [#allocation4]  }
   0xa   :  { %1748 = vmatpush3.bf16.msra.mxu0 %v2087_v20  ;;  %v2121_v38 = vpack.c.bf16 %v59_v13, %v56_v12  ;;  %v151_v39 = vsub.f32 %v2089_v21, %v150_v33  ;;  %v157_v40 = vand.u32 4294901760, %v2095_v23  ;;  %v164_v41 = vand.u32 4294901760, %v2097_v24  ;;  %v583_v56 = vld [vmem:[%s2571_s4 + $0x10] sm:$0xff]  ;;  %v584_v57 = vld [vmem:[%s2571_s4 + $0x18] sm:$0xff]  ;;  %v2162_v58 = vld [vmem:[%s2571_s4 + $0x20] sm:$0xff]  ;;  %s1253_s20 = sshll.u32 %s2013_s19, 4  ;;  %s1254_s20 = int_to_ptr.vmem [resolvable:$true] %s1253_s20 }
   0xb   :  { %1749 = vmatprep.subr.bf16.mxu0 %v2010_v3  ;;  %v2129_v42 = vsub.f32 %v31_v22, %v65_v31  ;;  %v118_v43 = vand.u32 4294901760, %v2109_v34  ;;  %v171_v44 = vand.u32 4294901760, %v2105_v32  ;;  %v131_v45 = vand.u32 4294901760, %v130_v35  ;;  %v2170_v62 = vld [vmem:[%s2571_s4 + $0x28] sm:$0xff]  ;;  %v2175_v63 = vld [vmem:[%s2571_s4 + $0x30] sm:$0xff]  ;;  %v2182_v9 = vld [vmem:[%s2571_s4 + $0x38] sm:$0xff]  ;;  %p1991_p1 = scmp.lt.s32.totalorder %s1254_s20, %s1254_s20 }
   0xc   :  { %v138_v46 = vand.u32 4294901760, %v137_v36  ;;  %v145_v47 = vand.u32 4294901760, %v144_v37  ;;  %v152_v48 = vand.u32 4294901760, %v151_v39  ;;  %v158_v50 = vsub.f32 %v2095_v23, %v157_v40  ;;  %s1986_s21 = scalar_lea.vmem %s1254_s20, 32 }
   0xd   :  { %v119_v49 = vsub.f32 %v2109_v34, %v118_v43  ;;  %v165_v51 = vsub.f32 %v2097_v24, %v164_v41  ;;  %v2143_v52 = vpack.c.bf16 %v65_v31, %v62_v25  ;;  %v178_v55 = vand.u32 4294901760, %v2129_v42  ;;  %p1987_p0 = scmp.ne.s32.totalorder %s1254_s20, %s1986_s21  ;;  %p1992_p2 = scmp.lt.s32.totalorder %s1986_s21, %s1986_s21 }
   0xe   :  { %1751 = vmatpush3.bf16.msra.mxu0 %v2121_v38  ;;  %v1756_v59 = vpack.c.bf16 %v138_v46, %v131_v45  ;;  %v1759_v60 = vpack.c.bf16 %v152_v48, %v145_v47  ;;  %v172_v61 = vsub.f32 %v2105_v32, %v171_v44  ;;  %v159_v1 = vand.u32 4294901760, %v158_v50 }
   0xf   :  { %1752 = vmatprep.subr.bf16.mxu0 %v2010_v3  ;;  %v120_v0 = vand.u32 4294901760, %v119_v49  ;;  %v166_v2 = vand.u32 4294901760, %v165_v51  ;;  %v605_v4 = vand.u32 4294901760, %v581_v53  ;;  %v608_v5 = vand.u32 4294901760, %v582_v54  ;;  %p1993_p3 = por %p1992_p2, %p1991_p1 }
  0x10   :  { %v611_v6 = vand.u32 4294901760, %v583_v56  ;;  %v614_v7 = vand.u32 4294901760, %v584_v57  ;;  %v617_v8 = vand.u32 4294901760, %v2162_v58  ;;  %v179_v11 = vsub.f32 %v2129_v42, %v178_v55 }
  0x11   :  { %v2188_v12 = vsub.f32 %v581_v53, %v605_v4  ;;  %v620_v13 = vand.u32 4294901760, %v2170_v62  ;;  %v623_v14 = vand.u32 4294901760, %v2175_v63  ;;  %v2192_v19 = vsub.f32 %v582_v54, %v608_v5  ;;  %p1994_p4 = pnand %p1993_p3, %p1987_p0 }
  0x12   :  { %1754 = vmatpush3.bf16.msra.mxu0 %v2143_v52  ;;  %v2194_v22 = vsub.f32 %v583_v56, %v611_v6  ;;  %v2196_v25 = vsub.f32 %v584_v57, %v614_v7  ;;  %v2201_v26 = vsub.f32 %v2162_v58, %v617_v8  ;;  %v2209_v36 = vpack.c.bf16 %v608_v5, %v605_v4 }
  0x13   :  { %1755 = vmatprep.subr.bf16.mxu0 %v2010_v3  ;;  %v2574_v31 = vand.u32 4294901760, %v2188_v12  ;;  %v2207_v35 = vsub.f32 %v2170_v62, %v620_v13  ;;  %v2575_v37 = vand.u32 4294901760, %v2182_v9  ;;  %v2576_v39 = vand.u32 4294901760, %v2192_v19 }
  0x14   :  { %v2577_v45 = vand.u32 4294901760, %v2194_v22  ;;  %v2578_v46 = vand.u32 4294901760, %v2196_v25  ;;  %v726_v47 = vand.u32 4294901760, %v2201_v26  ;;  %v2226_v50 = vsub.f32 %v2175_v63, %v623_v14 }
  0x15   :  { %1436 = vmatmul.mubr.f32.vlgmr.msra.gmra.mrb[0].mxu0 %v120_v0  ;;  %v699_v48 = vsub.f32 %v2188_v12, %v2574_v31  ;;  %v733_v49 = vand.u32 4294901760, %v2207_v35  ;;  %v2231_v51 = vsub.f32 %v2182_v9, %v2575_v37  ;;  %v706_v53 = vsub.f32 %v2192_v19, %v2576_v39 }
  0x16   :  { %1757 = vmatpush3.bf16.msra.mxu0 %v1756_v59  ;;  %1454 = vmatprep.mubr.msk.f32.mxu0 %vm2011_vm0, %v2012_v10  ;;  %v713_v54 = vsub.f32 %v2194_v22, %v2577_v45  ;;  %v720_v56 = vsub.f32 %v2196_v25, %v2578_v46  ;;  %v1762_v57 = vpack.c.bf16 %v166_v2, %v159_v1  ;;  %v173_v59 = vand.u32 4294901760, %v172_v61 }
  0x17   :  { %1758 = vmatprep.subr.bf16.mxu0 %v2010_v3  ;;  %v180_v0 = vand.u32 4294901760, %v179_v11  ;;  %v700_v4 = vand.u32 4294901760, %v699_v48  ;;  %v707_v5 = vand.u32 4294901760, %v706_v53  ;;  %v727_v39 = vsub.f32 %v2201_v26, %v726_v47 }
  0x18   :  { %v714_v31 = vand.u32 4294901760, %v713_v54  ;;  %v721_v37 = vand.u32 4294901760, %v720_v56  ;;  %v734_v45 = vsub.f32 %v2207_v35, %v733_v49  ;;  %v740_v46 = vand.u32 4294901760, %v2226_v50 }
  0x19   :  { %v747_v61 = vand.u32 4294901760, %v2231_v51  ;;  %v2251_v1 = vpack.c.bf16 %v614_v7, %v611_v6  ;;  %v1765_v2 = vpack.c.bf16 %v180_v0, %v173_v59  ;;  %v728_v48 = vand.u32 4294901760, %v727_v39 }
  0x1a   :  { %1760 = vmatpush3.bf16.msra.mxu0 %v1759_v60  ;;  %v1840_v60 = vpack.c.bf16 %v707_v5, %v700_v4  ;;  %v1843_v11 = vpack.c.bf16 %v721_v37, %v714_v31  ;;  %v735_v53 = vand.u32 4294901760, %v734_v45  ;;  %v741_v54 = vsub.f32 %v2226_v50, %v740_v46 }
  0x1b   :  { %1761 = vmatprep.subr.bf16.mxu0 %v2010_v3  ;;  %v748_v6 = vsub.f32 %v2231_v51, %v747_v61  ;;  %v1768_v7 = vpack.c.bf16 %v2080_v17, %v2078_v16  ;;  %v1771_v45 = vpack.c.bf16 %v2089_v21, %v2082_v18  ;;  %v1777_v59 = vpack.c.bf16 %v2129_v42, %v2105_v32  ;;  %v590_v18 = vld [vmem:[%s2571_s4 + $0x48] sm:$0xff]  ;;  %v593_v42 = vld [vmem:[%s2571_s4 + $0x60] sm:$0xff] }
  0x1c   :  { %1841 = vmatpush3.bf16.msra.mxu1 %v1840_v60  ;;  %v1846_v31 = vpack.c.bf16 %v735_v53, %v728_v48  ;;  %v742_v37 = vand.u32 4294901760, %v741_v54  ;;  %v1792_v0 = vpack.c.bf16 %v136_v29, %v129_v28  ;;  %v1795_v4 = vpack.c.bf16 %v150_v33, %v143_v30  ;;  %v592_v28 = vld [vmem:[%s2571_s4 + $0x58] sm:$0xff] }
  0x1d   :  { %1842 = vmatprep.subr.bf16.mxu1 %v2010_v3  ;;  %v749_v39 = vand.u32 4294901760, %v748_v6  ;;  %v1798_v16 = vpack.c.bf16 %v164_v41, %v157_v40  ;;  %v1801_v17 = vpack.c.bf16 %v178_v55, %v171_v44  ;;  %v632_v21 = vand.u32 4294901760, %v590_v18 }
  0x1e   :  { %1763 = vmatpush3.bf16.msra.mxu0 %v1762_v57  ;;  %v1774_v57 = vpack.c.bf16 %v2097_v24, %v2095_v23  ;;  %v638_v33 = vand.u32 4294901760, %v592_v28  ;;  %v641_v60 = vand.u32 4294901760, %v593_v42  ;;  %v2379_v54 = vpack.c.bf16 %v620_v13, %v617_v8 }
  0x1f   :  { %1764 = vmatprep.subr.bf16.mxu0 %v2010_v3  ;;  %v1849_v56 = vpack.c.bf16 %v749_v39, %v742_v37  ;;  %v2341_v24 = vsub.f32 %v590_v18, %v632_v21  ;;  %v596_v37 = vld [vmem:[%s2571_s4 + $0x78] sm:$0xff]  ;;  %vm1245_vm2 = vcmask 517120  }
  0x20   :  { %1844 = vmatpush3.bf16.msra.mxu1 %v1843_v11  ;;  %v2359_v41 = vsub.f32 %v592_v28, %v638_v33  ;;  %v2381_v6 = vsub.f32 %v593_v42, %v641_v60 }
  0x21   :  { %1845 = vmatprep.subr.bf16.mxu1 %v2010_v3  ;;  %v761_v30 = vand.u32 4294901760, %v2341_v24 }
  0x22   :  { %1766 = vmatpush3.bf16.msra.mxu0 %v1765_v2  ;;  %v775_v5 = vand.u32 4294901760, %v2359_v41  ;;  %v782_v62 = vand.u32 4294901760, %v2381_v6 }
  0x23   :  { %1767 = vmatprep.subr.bf16.mxu0 %v2010_v3 }
  0x24   :  { %1847 = vmatpush3.bf16.msra.mxu1 %v1846_v31  ;;  %v776_v53 = vsub.f32 %v2359_v41, %v775_v5  ;;  %v595_v31 = vld [vmem:[%s2571_s4 + $0x70] sm:$0xff] }
  0x25   :  { %1455 = vmatmul.mubr.f32.vlgmr.msra.gmra.mrb[0].mxu0 %v2100_v27  ;;  %1848 = vmatprep.subr.bf16.mxu1 %v2010_v3  ;;  %v647_v58 = vand.u32 4294901760, %v595_v31 }
  0x26   :  { %1769 = vmatpush3.bf16.msra.mxu0 %v1768_v7  ;;  %1473 = vmatprep.mubr.msk.f32.mxu0 %vm2011_vm0, %v2012_v10 }
  0x27   :  { %1770 = vmatprep.subr.bf16.mxu0 %v2010_v3 }
  0x28   :  { %1850 = vmatpush3.bf16.msra.mxu1 %v1849_v56  ;;  %v650_v56 = vand.u32 4294901760, %v596_v37 }
  0x29   :  { %1851 = vmatprep.subr.bf16.mxu1 %v2010_v3 }
  0x2a   :  { %1772 = vmatpush3.bf16.msra.mxu0 %v1771_v45  ;;  %v777_v45 = vand.u32 4294901760, %v776_v53 }
  0x2b   :  { %1773 = vmatprep.subr.bf16.mxu0 %v2010_v3 }
  0x2e   :  { %1775 = vmatpush3.bf16.msra.mxu0 %v1774_v57  ;;  %v2396_v57 = vsub.f32 %v595_v31, %v647_v58 }
  0x2f   :  { %1776 = vmatprep.subr.bf16.mxu0 %v2010_v3 }
  0x32   :  { %1778 = vmatpush3.bf16.msra.mxu0 %v1777_v59  ;;  %v2398_v59 = vsub.f32 %v596_v37, %v650_v56  ;;  %v1864_v37 = vpack.c.bf16 %v2192_v19, %v2188_v12 }
  0x33   :  { %1779 = vmatprep.subr.bf16.mxu0 %v2010_v3 }
  0x34   :  { %v803_v18 = vand.u32 4294901760, %v2398_v59 }
  0x35   :  { %1474 = vmatmul.mubr.f32.vlgmr.msra.gmra.mrb[0].mxu0 %v2109_v34 }
  0x36   :  { %1781 = vmatpush3.bf16.msra.mxu0 %v2076_v15  ;;  %1492 = vmatprep.mubr.msk.f32.mxu0 %vm2011_vm0, %v2012_v10  ;;  %v804_v28 = vsub.f32 %v2398_v59, %v803_v18 }
  0x37   :  { %1782 = vmatprep.subr.bf16.mxu0 %v2010_v3 }
  0x38   :  { %v805_v42 = vand.u32 4294901760, %v804_v28  ;;  %v2582_v28 = vand.u32 4294901760, %v2194_v22 }
  0x3a   :  { %1784 = vmatpush3.bf16.msra.mxu0 %v2087_v20 }
  0x3b   :  { %1785 = vmatprep.subr.bf16.mxu0 %v2010_v3 }
  0x3e   :  { %1787 = vmatpush3.bf16.msra.mxu0 %v2121_v38 }
  0x3f   :  { %1788 = vmatprep.subr.bf16.mxu0 %v2010_v3 }
  0x42   :  { %1790 = vmatpush3.bf16.msra.mxu0 %v2143_v52 }
  0x43   :  { %1791 = vmatprep.subr.bf16.mxu0 %v2010_v3 }
  0x45   :  { %1493 = vmatmul.mubr.f32.vlgmr.msra.gmra.mrb[0].mxu0 %v118_v43  ;;  %v594_v43 = vld [vmem:[%s2571_s4 + $0x68] sm:$0xff] }
  0x46   :  { %1793 = vmatpush3.bf16.msra.mxu0 %v1792_v0  ;;  %1511 = vmatprep.mubr.msk.f32.mxu0 %vm2011_vm0, %v2012_v10  ;;  %v644_v2 = vand.u32 4294901760, %v594_v43  ;;  %v2579_v0 = vand.u32 4294901760, %v2182_v9 }
  0x47   :  { %1794 = vmatprep.subr.bf16.mxu0 %v2010_v3 }
  0x48   :  { %v2383_v7 = vsub.f32 %v594_v43, %v644_v2 }
  0x4a   :  { %1796 = vmatpush3.bf16.msra.mxu0 %v1795_v4  ;;  %v789_v8 = vand.u32 4294901760, %v2383_v7  ;;  %v2404_v4 = vpack.c.bf16 %v2579_v0, %v623_v14  ;;  %v1870_v0 = vpack.c.bf16 %v2207_v35, %v2201_v26 }
  0x4b   :  { %1797 = vmatprep.subr.bf16.mxu0 %v2010_v3 }
  0x4c   :  { %v1930_v26 = vpack.c.bf16 %v789_v8, %v782_v62 }
  0x4e   :  { %1799 = vmatpush3.bf16.msra.mxu0 %v1798_v16  ;;  %v783_v16 = vsub.f32 %v2381_v6, %v782_v62 }
  0x4f   :  { %1800 = vmatprep.subr.bf16.mxu0 %v2010_v3 }
  0x50   :  { %v784_v63 = vand.u32 4294901760, %v783_v16 }
  0x52   :  { %1802 = vmatpush3.bf16.msra.mxu0 %v1801_v17  ;;  %v790_v17 = vsub.f32 %v2383_v7, %v789_v8 }
  0x53   :  { %1803 = vmatprep.subr.bf16.mxu0 %v2010_v3 }
  0x54   :  { %v791_v9 = vand.u32 4294901760, %v790_v17  ;;  %v1873_v17 = vpack.c.bf16 %v2231_v51, %v2226_v50 }
  0x55   :  { %1512 = vmatmul.mubr.f32.vlgmr.msra.gmra.mrb[0].mxu0 %v2100_v27 }
  0x56   :  { %1805 = vmatpush3.bf16.msra.mxu0 %v2076_v15  ;;  %1530 = vmatprep.mubr.msk.f32.mxu0 %vm2011_vm0, %v2012_v10  ;;  %v589_v15 = vld [vmem:[%s2571_s4 + $0x40] sm:$0xff] }
  0x57   :  { %1806 = vmatprep.subr.bf16.mxu0 %v2010_v3 }
  0x5a   :  { %1808 = vmatpush3.bf16.msra.mxu0 %v2087_v20  ;;  %v629_v20 = vand.u32 4294901760, %v589_v15 }
  0x5b   :  { %1809 = vmatprep.subr.bf16.mxu0 %v2010_v3 }
  0x5c   :  { %v2339_v23 = vsub.f32 %v589_v15, %v629_v20  ;;  %v796_v15 = vand.u32 4294901760, %v2396_v57  ;;  %v2416_v14 = vpack.c.bf16 %v632_v21, %v629_v20  ;;  %v2433_v21 = vpack.c.bf16 %v644_v2, %v641_v60  ;;  %v1261_v2 = vld [vmem:[%s2570_s3] ss:$0 sm:$0xff] }
  0x5d   :  { %v1885_v60 = vpack.c.bf16 %v2398_v59, %v2396_v57 }
  0x5e   :  { %1811 = vmatpush3.bf16.msra.mxu0 %v2121_v38  ;;  %v754_v29 = vand.u32 4294901760, %v2339_v23  ;;  %v762_v38 = vsub.f32 %v2341_v24, %v761_v30  ;;  %v1933_v35 = vpack.c.bf16 %v803_v18, %v796_v15 }
  0x5f   :  { %1812 = vmatprep.subr.bf16.mxu0 %v2010_v3 }
  0x60   :  { %v755_v34 = vsub.f32 %v2339_v23, %v754_v29 }
  0x62   :  { %1814 = vmatpush3.bf16.msra.mxu0 %v2143_v52  ;;  %v756_v44 = vand.u32 4294901760, %v755_v34  ;;  %v763_v52 = vand.u32 4294901760, %v762_v38  ;;  %v1858_v34 = vpack.c.bf16 %v791_v9, %v784_v63  ;;  %v2580_v63 = vand.u32 4294901760, %v2188_v12 }
  0x63   :  { %1815 = vmatprep.subr.bf16.mxu0 %v2010_v3  ;;  %v2581_v9 = vand.u32 4294901760, %v2192_v19  ;;  %v1918_v12 = vpack.c.bf16 %v733_v49, %v726_v47  ;;  %v1921_v19 = vpack.c.bf16 %v747_v61, %v740_v46  ;;  %v1262_v46 = vld [vmem:[%s2572_s5] ss:$0 sm:$0xff] }
  0x64   :  { %v1852_v11 = vpack.c.bf16 %v763_v52, %v756_v44  ;;  %v1882_v52 = vpack.c.bf16 %v2383_v7, %v2381_v6 }
  0x65   :  { %1531 = vmatmul.mubr.f32.vlgmr.msra.gmra.mrb[0].mxu0 %v2100_v27  ;;  %v591_v27 = vld [vmem:[%s2571_s4 + $0x50] sm:$0xff] }
  0x66   :  { %1817 = vmatpush3.bf16.msra.mxu0 %v2209_v36  ;;  %1565 = vmatprep.mubr.msk.f32.mxu0 %vm2011_vm0, %v2012_v10  ;;  %v635_v32 = vand.u32 4294901760, %v591_v27 }
  0x67   :  { %1818 = vmatprep.subr.bf16.mxu0 %v2010_v3  ;;  %1853 = vmatpush3.bf16.msra.mxu1 %v1852_v11 }
  0x68   :  { %v2357_v40 = vsub.f32 %v591_v27, %v635_v32  ;;  %1854 = vmatprep.subr.bf16.mxu1 %v2010_v3  ;;  %v797_v27 = vsub.f32 %v2396_v57, %v796_v15  ;;  %v2426_v43 = vpack.c.bf16 %v638_v33, %v635_v32  ;;  %v2437_v32 = vpack.c.bf16 %v650_v56, %v647_v58 }
  0x69   :  { %v1876_v33 = vpack.c.bf16 %v2341_v24, %v2339_v23  ;;  %v1867_v58 = vpack.c.bf16 %v2196_v25, %v2194_v22  ;;  %v1924_v22 = vpack.c.bf16 %v761_v30, %v754_v29 }
  0x6a   :  { %1820 = vmatpush3.bf16.msra.mxu0 %v2251_v1  ;;  %v768_v55 = vand.u32 4294901760, %v2357_v40  ;;  %v798_v38 = vand.u32 4294901760, %v797_v27  ;;  %v1879_v44 = vpack.c.bf16 %v2359_v41, %v2357_v40  ;;  %v1912_v27 = vpack.c.bf16 %v2581_v9, %v2580_v63 }
  0x6b   :  { %1821 = vmatprep.subr.bf16.mxu0 %v2010_v3 }
  0x6c   :  { %v769_v48 = vsub.f32 %v2357_v40, %v768_v55  ;;  %v1861_v20 = vpack.c.bf16 %v805_v42, %v798_v38 }
  0x6e   :  { %v770_v39 = vand.u32 4294901760, %v769_v48  ;;  %1823 = vmatpush3.bf16.msra.mxu0 %v2379_v54 }
  0x6f   :  { %1824 = vmatprep.subr.bf16.mxu0 %v2010_v3 }
  0x70   :  { %v1855_v13 = vpack.c.bf16 %v777_v45, %v770_v39 }
  0x72   :  { %1856 = vmatpush3.bf16.msra.mxu1 %v1855_v13  ;;  %1826 = vmatpush3.bf16.msra.mxu0 %v2404_v4 }
  0x73   :  { %1857 = vmatprep.subr.bf16.mxu1 %v2010_v3  ;;  %1827 = vmatprep.subr.bf16.mxu0 %v2010_v3 }
  0x76   :  { %1859 = vmatpush3.bf16.msra.mxu1 %v1858_v34  ;;  %1829 = vmatpush3.bf16.msra.mxu0 %v2416_v14  ;;  %v2583_v34 = vand.u32 4294901760, %v2196_v25  ;;  %v1927_v25 = vpack.c.bf16 %v775_v5, %v768_v55 }
  0x77   :  { %1860 = vmatprep.subr.bf16.mxu1 %v2010_v3  ;;  %1830 = vmatprep.subr.bf16.mxu0 %v2010_v3 }
  0x78   :  { %v1915_v38 = vpack.c.bf16 %v2583_v34, %v2582_v28 }
  0x7a   :  { %1862 = vmatpush3.bf16.msra.mxu1 %v1861_v20  ;;  %1832 = vmatpush3.bf16.msra.mxu0 %v2426_v43 }
  0x7b   :  { %1863 = vmatprep.subr.bf16.mxu1 %v2010_v3  ;;  %1833 = vmatprep.subr.bf16.mxu0 %v2010_v3 }
  0x7e   :  { %1835 = vmatpush3.bf16.msra.mxu0 %v2433_v21 }
  0x7f   :  { %1836 = vmatprep.subr.bf16.mxu0 %v2010_v3 }
  0x82   :  { %1838 = vmatpush3.bf16.msra.mxu0 %v2437_v32 }
 0x138   :  { %v576_v11 = vpop.f32.mrb[0].mxu0 }
 0x139   :  { %v1959_v48 = vadd.f32 %v1261_v2, %v576_v11  ;;  %v1532_v53 = vpop.f32.mrb[1].mxu0 }
 0x13b   :  { %1984 = vtanh.f32 %v1959_v48 }
 0x145   :  { %v1985_v31 = vpop.eup %1984 }
 0x146   :  { %v2453_v39 = vand.u32 4294901760, %v1985_v31 }
 0x148   :  { %1601 = vmatmul.mubr.f32.vlgmr.msra.gmra.mrb[0].mxu1 %v2453_v39  ;;  %v686_v45 = vsub.f32 %v1985_v31, %v2453_v39 }
 0x149   :  { %1865 = vmatpush3.bf16.msra.mxu1 %v1864_v37  ;;  %1635 = vmatprep.mubr.msk.f32.mxu1 %vm2011_vm0, %v2012_v10 }
 0x14a   :  { %1866 = vmatprep.subr.bf16.mxu1 %v2010_v3  ;;  %v687_v56 = vand.u32 4294901760, %v686_v45 }
 0x14c   :  { %v688_v13 = vsub.f32 %v686_v45, %v687_v56 }
 0x14d   :  { %1868 = vmatpush3.bf16.msra.mxu1 %v1867_v58 }
 0x14e   :  { %1869 = vmatprep.subr.bf16.mxu1 %v2010_v3  ;;  %v689_v16 = vand.u32 4294901760, %v688_v13 }
 0x150   :  { %1566 = vmatmul.mubr.f32.vlgmr.msra.gmra.mrb[2].mxu0 %v689_v16 }
 0x151   :  { %1871 = vmatpush3.bf16.msra.mxu1 %v1870_v0 }
 0x152   :  { %1872 = vmatprep.subr.bf16.mxu1 %v2010_v3 }
 0x155   :  { %1874 = vmatpush3.bf16.msra.mxu1 %v1873_v17 }
 0x156   :  { %1875 = vmatprep.subr.bf16.mxu1 %v2010_v3 }
 0x159   :  { %1877 = vmatpush3.bf16.msra.mxu1 %v1876_v33 }
 0x15a   :  { %1878 = vmatprep.subr.bf16.mxu1 %v2010_v3 }
 0x15d   :  { %1880 = vmatpush3.bf16.msra.mxu1 %v1879_v44 }
 0x15e   :  { %1881 = vmatprep.subr.bf16.mxu1 %v2010_v3 }
 0x161   :  { %1883 = vmatpush3.bf16.msra.mxu1 %v1882_v52 }
 0x162   :  { %1884 = vmatprep.subr.bf16.mxu1 %v2010_v3 }
 0x165   :  { %1886 = vmatpush3.bf16.msra.mxu1 %v1885_v60 }
 0x166   :  { %1887 = vmatprep.subr.bf16.mxu1 %v2010_v3 }
 0x168   :  { %1636 = vmatmul.mubr.f32.vlgmr.msra.gmra.mrb[0].mxu1 %v686_v45 }
 0x169   :  { %1889 = vmatpush3.bf16.msra.mxu1 %v2209_v36  ;;  %1670 = vmatprep.mubr.msk.f32.mxu1 %vm2011_vm0, %v2012_v10 }
 0x16a   :  { %1890 = vmatprep.subr.bf16.mxu1 %v2010_v3 }
 0x16d   :  { %1892 = vmatpush3.bf16.msra.mxu1 %v2251_v1 }
 0x16e   :  { %1893 = vmatprep.subr.bf16.mxu1 %v2010_v3 }
 0x171   :  { %1895 = vmatpush3.bf16.msra.mxu1 %v2379_v54 }
 0x172   :  { %1896 = vmatprep.subr.bf16.mxu1 %v2010_v3 }
 0x175   :  { %1898 = vmatpush3.bf16.msra.mxu1 %v2404_v4 }
 0x176   :  { %1899 = vmatprep.subr.bf16.mxu1 %v2010_v3 }
 0x179   :  { %1901 = vmatpush3.bf16.msra.mxu1 %v2416_v14 }
 0x17a   :  { %1902 = vmatprep.subr.bf16.mxu1 %v2010_v3 }
 0x17d   :  { %1904 = vmatpush3.bf16.msra.mxu1 %v2426_v43 }
 0x17e   :  { %1905 = vmatprep.subr.bf16.mxu1 %v2010_v3 }
 0x181   :  { %1907 = vmatpush3.bf16.msra.mxu1 %v2433_v21 }
 0x182   :  { %1908 = vmatprep.subr.bf16.mxu1 %v2010_v3 }
 0x185   :  { %1910 = vmatpush3.bf16.msra.mxu1 %v2437_v32 }
 0x186   :  { %1911 = vmatprep.subr.bf16.mxu1 %v2010_v3 }
 0x188   :  { %1671 = vmatmul.mubr.f32.vlgmr.msra.gmra.mrb[0].mxu1 %v687_v56 }
 0x189   :  { %1913 = vmatpush3.bf16.msra.mxu1 %v1912_v27  ;;  %1705 = vmatprep.mubr.msk.f32.mxu1 %vm2011_vm0, %v2012_v10 }
 0x18a   :  { %1914 = vmatprep.subr.bf16.mxu1 %v2010_v3 }
 0x18d   :  { %1916 = vmatpush3.bf16.msra.mxu1 %v1915_v38 }
 0x18e   :  { %1917 = vmatprep.subr.bf16.mxu1 %v2010_v3 }
 0x191   :  { %1919 = vmatpush3.bf16.msra.mxu1 %v1918_v12 }
 0x192   :  { %1920 = vmatprep.subr.bf16.mxu1 %v2010_v3 }
 0x195   :  { %1922 = vmatpush3.bf16.msra.mxu1 %v1921_v19 }
 0x196   :  { %1923 = vmatprep.subr.bf16.mxu1 %v2010_v3 }
 0x199   :  { %1925 = vmatpush3.bf16.msra.mxu1 %v1924_v22 }
 0x19a   :  { %1926 = vmatprep.subr.bf16.mxu1 %v2010_v3 }
 0x19d   :  { %1928 = vmatpush3.bf16.msra.mxu1 %v1927_v25 }
 0x19e   :  { %1929 = vmatprep.subr.bf16.mxu1 %v2010_v3 }
 0x1a1   :  { %1931 = vmatpush3.bf16.msra.mxu1 %v1930_v26 }
 0x1a2   :  { %1932 = vmatprep.subr.bf16.mxu1 %v2010_v3 }
 0x1a5   :  { %1934 = vmatpush3.bf16.msra.mxu1 %v1933_v35 }
 0x1a6   :  { %1935 = vmatprep.subr.bf16.mxu1 %v2010_v3 }
 0x1a8   :  { %1706 = vmatmul.mubr.f32.vlgmr.msra.gmra.mrb[0].mxu1 %v2453_v39 }
 0x1a9   :  { %1937 = vmatpush3.bf16.msra.mxu1 %v2209_v36  ;;  %1740 = vmatprep.mubr.msk.f32.mxu1 %vm2011_vm0, %v2012_v10 }
 0x1aa   :  { %1938 = vmatprep.subr.bf16.mxu1 %v2010_v3 }
 0x1ad   :  { %1940 = vmatpush3.bf16.msra.mxu1 %v2251_v1 }
 0x1ae   :  { %1941 = vmatprep.subr.bf16.mxu1 %v2010_v3 }
 0x1b1   :  { %1943 = vmatpush3.bf16.msra.mxu1 %v2379_v54 }
 0x1b2   :  { %1944 = vmatprep.subr.bf16.mxu1 %v2010_v3 }
 0x1b5   :  { %1946 = vmatpush3.bf16.msra.mxu1 %v2404_v4 }
 0x1b6   :  { %1947 = vmatprep.subr.bf16.mxu1 %v2010_v3 }
 0x1b9   :  { %1949 = vmatpush3.bf16.msra.mxu1 %v2416_v14 }
 0x1ba   :  { %1950 = vmatprep.subr.bf16.mxu1 %v2010_v3 }
 0x1bd   :  { %1952 = vmatpush3.bf16.msra.mxu1 %v2426_v43 }
 0x1be   :  { %1953 = vmatprep.subr.bf16.mxu1 %v2010_v3 }
 0x1c1   :  { %1955 = vmatpush3.bf16.msra.mxu1 %v2433_v21 }
 0x1c2   :  { %1956 = vmatprep.subr.bf16.mxu1 %v2010_v3 }
 0x1c5   :  { %1958 = vmatpush3.bf16.msra.mxu1 %v2437_v32 }
 0x1c8   :  { %1741 = vmatmul.mubr.f32.vlgmr.msra.gmra.mrb[0].mxu1 %v2453_v39 }
 0x223   :  { %v691_v10 = vpop.f32.mrb[2].mxu0 }
 0x224   :  { %v1567_v36 = vpop.f32.mrb[3].mxu0  ;;  %v692_v47 = vadd.f32 %v1262_v46, %v691_v10 }
 0x29b   :  { %v1241_v49 = vpop.f32.mrb[0].mxu1 }
 0x29c   :  { %v1961_v50 = vadd.f32 %v1241_v49, %v692_v47  ;;  %v1742_v51 = vpop.f32.mrb[1].mxu1 }
 0x29e   :  { %1246 = vst.msk [vmem:[#allocation4] sm:$0x3] %vm1245_vm2, %v1961_v50 }
 0x29f   :  { %1997 = shalt.err (!%p1994_p4)
}
 0x2a0   :  { %s1998_s5 = scalar_lea.hbm %s2573_s6, 32 }
 0x2a1   :  { %p1999_p5 = scmp.ne.s32.totalorder %s2573_s6, %s1998_s5  ;;  %p2002_p6 = scmp.lt.u32.totalorder %s1998_s5, %s2573_s6 }
 0x2a3   :  { %p2004_p7 = pnand %p2002_p6, %p1999_p5 }
 0x2a5   :  { %2007 = shalt.err (!%p2004_p7)
}
 0x2a6   :  { %1256 = dma.vmem_to_hbm [thread:$0]  %s1254_s20, 32, %s2573_s6, [#allocation5]  }
 0x2a7   :  { %2008 = dma.done.wait [#allocation5], 32  }
 0x2a8   :  { %2009 = vsyncadd [#allocation5], 4294967264 }
 0x2a9   :  { %1260 = vsyncpa [#allocation5], 1 }

</bundles_post_ra>
